<compile_context>
chip_gen: v6e
topology: v6e:2x2x1
jax: 0.10.0
libtpu: 0.0.40
codegen_flags: <defaults>
</compile_context>

<pallas_src>
import functools

import jax
import jax.numpy as jnp
from jax.experimental import pallas as pl
from jax.experimental.pallas import tpu as pltpu


def _conv_relu_stats_kernel(x_ref, w_ref, b_ref, mask_ref, y_ref, s_ref, q_ref, p_ref, *,
                            cin, kh, kw, wp, span, stride):
    """One image: build P(K, OH*Wp) in VMEM from the flat padded image (in-kernel im2col),
    y = relu(W @ P + b) channel-major / lane-dense, plus (Cout, 1) BN-stat partials."""
    img = x_ref[0]                                        # (Cin, L) flat padded image
    for t in range(kh * kw):
        ki, kj = divmod(t, kw)
        start = ki * wp + kj
        if stride == 1:
            win = img[:, start:start + span]              # contiguous lane slice per tap
        else:
            win = img[:, start:start + stride * (span - 1) + 1:stride]
        p_ref[t * cin:(t + 1) * cin, :] = win             # K rows ordered (ki, kj, cin)

    # (Cout, K) @ (K, span) -> (Cout, span): K contracted on sublanes, pixels lane-dense.
    acc = jax.lax.dot_general(w_ref[...], p_ref[...],
                              dimension_numbers=(((1,), (0,)), ((), ())),
                              preferred_element_type=jnp.float32)
    y = jnp.maximum(acc + b_ref[...], 0.0)                # bias + ReLU (before BN)
    y_ref[...] = y[None]                                  # lane-dense f32 write-back

    # Horizontal-padding overhang columns (ow >= OW) are not real pixels: zero them out of
    # the statistics with a precomputed 0/1 mask (no per-tile iota/mod/select work).
    ys = y * mask_ref[...]
    s_ref[...] = jnp.sum(ys, axis=1, keepdims=True)[None]       # (1, Cout, 1) partial sum
    q_ref[...] = jnp.sum(ys * ys, axis=1, keepdims=True)[None]  # (1, Cout, 1) partial sumsq


def _bn_apply_kernel(y_ref, sc_ref, sh_ref, o_ref, *, ow):
    """out[n] = y[n, :, :, :OW] * scale + shift -- crops the Wp overhang, writes NCHW."""
    y = y_ref[0][:, :, :ow]                               # (Cout, OH, OW)
    sc = sc_ref[...][:, :, None]                          # (Cout, 1, 1)
    sh = sh_ref[...][:, :, None]
    o_ref[...] = (y * sc + sh)[None]


def base_conv2d(x_nchw, weight, bias, gamma, beta, *, stride, padding, eps=1e-5):
    N, Cin, H, W = x_nchw.shape
    Cout, _, KH, KW = weight.shape

    OH = (H + 2 * padding - KH) // stride + 1
    OW = (W + 2 * padding - KW) // stride + 1
    Hp, Wp = H + 2 * padding, W + 2 * padding
    span = OH * Wp                      # per-image "virtual pixel" count (OH rows of width Wp)
    M = N * OH * OW                     # true pixel count for the BN statistics
    K = KH * KW * Cin

    # ---- glue: pad + flatten the image (no im2col blow-up in HBM) ------------------------
    xp = jnp.pad(x_nchw.astype(jnp.float32),
                 ((0, 0), (0, 0), (padding, padding), (padding, padding)))
    xflat = xp.reshape(N, Cin, Hp * Wp)
    # Largest in-kernel tap window reaches index (KH-1)*Wp + (KW-1) + stride*(span-1);
    # extend with zeros so every slice is in bounds (extras only feed masked columns).
    L = (KH - 1) * Wp + (KW - 1) + stride * (span - 1) + 1
    if L > Hp * Wp:
        xflat = jnp.pad(xflat, ((0, 0), (0, 0), (0, L - Hp * Wp)))
    L = max(L, Hp * Wp)

    # Weight as (Cout, K) with K ordered (ki, kj, cin) to match the in-kernel tap order.
    w2 = jnp.transpose(weight, (0, 2, 3, 1)).reshape(Cout, K).astype(jnp.float32)
    b2 = bias.reshape(Cout, 1).astype(jnp.float32)
    # 0/1 validity mask over the span columns: valid iff (col % Wp) < OW.
    valid = (jnp.arange(span, dtype=jnp.int32) % Wp < OW).astype(jnp.float32).reshape(1, span)

    cparams = pltpu.CompilerParams(
        dimension_semantics=("parallel",),          # N >= 2 grid steps -> both v7x cores busy
        vmem_limit_bytes=48 * 1024 * 1024)          # headroom under v7x's 64 MiB physical VMEM

    # ---- kernel 1: in-kernel im2col + conv + bias + ReLU + per-image channel stats -------
    k1 = functools.partial(_conv_relu_stats_kernel,
                           cin=Cin, kh=KH, kw=KW, wp=Wp, span=span, stride=stride)
    y_flat, part_s, part_q = pl.pallas_call(
        k1,
        out_shape=(jax.ShapeDtypeStruct((N, Cout, span), jnp.float32),
                   jax.ShapeDtypeStruct((N, Cout, 1), jnp.float32),
                   jax.ShapeDtypeStruct((N, Cout, 1), jnp.float32)),
        grid_spec=pltpu.PrefetchScalarGridSpec(
            num_scalar_prefetch=0,
            grid=(N,),
            in_specs=[pl.BlockSpec((1, Cin, L), lambda n: (n, 0, 0)),
                      pl.BlockSpec((Cout, K), lambda n: (0, 0)),
                      pl.BlockSpec((Cout, 1), lambda n: (0, 0)),
                      pl.BlockSpec((1, span), lambda n: (0, 0))],
            out_specs=(pl.BlockSpec((1, Cout, span), lambda n: (n, 0, 0)),
                       pl.BlockSpec((1, Cout, 1), lambda n: (n, 0, 0)),
                       pl.BlockSpec((1, Cout, 1), lambda n: (n, 0, 0))),
            scratch_shapes=[pltpu.VMEM((K, span), jnp.float32)]),
        compiler_params=cparams,
    )(xflat, w2, b2, valid)

    # ---- glue: fold batch stats into per-channel scale / shift ---------------------------
    s = jnp.sum(part_s[:, :, 0], axis=0)
    q = jnp.sum(part_q[:, :, 0], axis=0)
    mean = s / M
    var = jnp.maximum(q / M - mean * mean, 0.0)     # biased var (PyTorch BN fwd), clamped >= 0
    inv = jax.lax.rsqrt(var + eps)
    g = gamma.astype(jnp.float32)
    scale = (g * inv).reshape(Cout, 1)
    shift = (beta.astype(jnp.float32) - mean * g * inv).reshape(Cout, 1)

    # ---- kernel 2: apply batch norm, crop Wp -> OW, write the NCHW output directly -------
    y4 = y_flat.reshape(N, Cout, OH, Wp)            # same bytes: free reshape
    out = pl.pallas_call(
        functools.partial(_bn_apply_kernel, ow=OW),
        out_shape=jax.ShapeDtypeStruct((N, Cout, OH, OW), jnp.float32),
        grid_spec=pltpu.PrefetchScalarGridSpec(
            num_scalar_prefetch=0,
            grid=(N,),
            in_specs=[pl.BlockSpec((1, Cout, OH, Wp), lambda n: (n, 0, 0, 0)),
                      pl.BlockSpec((Cout, 1), lambda n: (0, 0)),
                      pl.BlockSpec((Cout, 1), lambda n: (0, 0))],
            out_specs=pl.BlockSpec((1, Cout, OH, OW), lambda n: (n, 0, 0, 0))),
        compiler_params=cparams,
    )(y4, scale, shift)

    return out


def reference(x, w, b, gamma, beta, *, stride, padding, eps=1e-5):
    """Pure-JAX f32 reference of BaseConv2d.forward (train-mode BN)."""
    y = jax.lax.conv_general_dilated(
        x, w, (stride, stride), [(padding, padding), (padding, padding)],
        dimension_numbers=('NCHW', 'OIHW', 'NCHW'),
        precision=jax.lax.Precision.HIGHEST)
    y = y + b.reshape(1, -1, 1, 1)
    y = jnp.maximum(y, 0.0)
    mean = y.mean(axis=(0, 2, 3), keepdims=True)
    var = ((y - mean) ** 2).mean(axis=(0, 2, 3), keepdims=True)
    return ((y - mean) * jax.lax.rsqrt(var + eps)
            * gamma.reshape(1, -1, 1, 1) + beta.reshape(1, -1, 1, 1))


if __name__ == "__main__":
    key = jax.random.PRNGKey(0)
    k_x, k_w, k_b = jax.random.split(key, 3)

    # Small shapes consistent with the module: in_ch=4, out_ch=8, k=3, stride=1, pad=1
    N, Cin, H, W = 2, 4, 16, 16
    Cout, KH, KW, stride, padding = 8, 3, 3, 1, 1

    x = jax.random.normal(k_x, (N, Cin, H, W), dtype=jnp.float32)
    fan_in = Cin * KH * KW
    bound = 1.0 / (fan_in ** 0.5)
    weight = jax.random.uniform(k_w, (Cout, Cin, KH, KW),
                                minval=-bound, maxval=bound, dtype=jnp.float32)
    bias = jax.random.uniform(k_b, (Cout,), minval=-bound, maxval=bound, dtype=jnp.float32)
    gamma = jnp.ones((Cout,), jnp.float32)   # nn.BatchNorm2d default init
    beta = jnp.zeros((Cout,), jnp.float32)

    fwd = jax.jit(functools.partial(base_conv2d, stride=stride, padding=padding))
    out = jax.block_until_ready(fwd(x, weight, bias, gamma, beta))

    ref = reference(x, weight, bias, gamma, beta, stride=stride, padding=padding)
    assert out.shape == (N, Cout, H, W)
    # Full f32 data path (no bf16 intermediates): tolerance tightened 5e-2 -> 1e-2; the
    # remaining slack only covers TPU matmul pass decomposition vs the XLA reference conv.
    assert jnp.allclose(out, ref, atol=1e-2, rtol=1e-2), "mismatch vs reference"

    print("KERNEL_OK")
</pallas_src>

<mosaic_0001>
module attributes {stable_mosaic.version = 11 : i64} {
  func.func @_conv_relu_stats_kernel(%arg0: i32, %arg1: memref<1x4x326xf32, #tpu.memory_space<vmem>>, %arg2: memref<8x36xf32, #tpu.memory_space<vmem>>, %arg3: memref<8x1xf32, #tpu.memory_space<vmem>>, %arg4: memref<1x288xf32, #tpu.memory_space<vmem>>, %arg5: memref<1x8x288xf32, #tpu.memory_space<vmem>>, %arg6: memref<1x8x1xf32, #tpu.memory_space<vmem>>, %arg7: memref<1x8x1xf32, #tpu.memory_space<vmem>>, %arg8: memref<36x288xf32, #tpu.memory_space<vmem>>) attributes {dimension_semantics = [#tpu.dimension_semantics<parallel>], iteration_bounds = array<i64: 2>, scalar_prefetch = 0 : i64, scratch_operands = 1 : i64, tpu.core_type = #tpu.core_type<tc>, window_params = [{transform_indices = @transform_0, window_bounds = array<i64: 1, 4, 326>}, {pipeline_mode = #tpu.pipeline_mode<synchronous>, transform_indices = @transform_1, window_bounds = array<i64: 8, 36>}, {pipeline_mode = #tpu.pipeline_mode<synchronous>, transform_indices = @transform_2, window_bounds = array<i64: 8, 1>}, {pipeline_mode = #tpu.pipeline_mode<synchronous>, transform_indices = @transform_3, window_bounds = array<i64: 1, 288>}, {transform_indices = @transform_4, window_bounds = array<i64: 1, 8, 288>}, {transform_indices = @transform_5, window_bounds = array<i64: 1, 8, 1>}, {transform_indices = @transform_6, window_bounds = array<i64: 1, 8, 1>}]} {
    %c0 = arith.constant 0 : index
    %c0_0 = arith.constant 0 : index
    %c0_1 = arith.constant 0 : index
    %0 = vector.load %arg1[%c0, %c0_0, %c0_1] : memref<1x4x326xf32, #tpu.memory_space<vmem>>, vector<1x4x326xf32>
    %1 = vector.shape_cast %0 : vector<1x4x326xf32> to vector<4x326xf32>
    %2 = vector.extract_strided_slice %1 {offsets = [0, 0], sizes = [4, 288], strides = [1, 1]} : vector<4x326xf32> to vector<4x288xf32>
    %c0_2 = arith.constant 0 : index
    %c0_3 = arith.constant 0 : index
    %3 = vector.load %arg8[%c0_2, %c0_3] : memref<36x288xf32, #tpu.memory_space<vmem>>, vector<4x288xf32>
    tpu.vector_store %arg8[%c0_2, %c0_3], %2 {strides = array<i32>} : memref<36x288xf32, #tpu.memory_space<vmem>>, vector<4x288xf32>,
    %4 = vector.extract_strided_slice %1 {offsets = [0, 1], sizes = [4, 288], strides = [1, 1]} : vector<4x326xf32> to vector<4x288xf32>
    %c4 = arith.constant 4 : index
    %c0_4 = arith.constant 0 : index
    %5 = vector.load %arg8[%c4, %c0_4] : memref<36x288xf32, #tpu.memory_space<vmem>>, vector<4x288xf32>
    tpu.vector_store %arg8[%c4, %c0_4], %4 {strides = array<i32>} : memref<36x288xf32, #tpu.memory_space<vmem>>, vector<4x288xf32>,
    %6 = vector.extract_strided_slice %1 {offsets = [0, 2], sizes = [4, 288], strides = [1, 1]} : vector<4x326xf32> to vector<4x288xf32>
    %c8 = arith.constant 8 : index
    %c0_5 = arith.constant 0 : index
    %7 = vector.load %arg8[%c8, %c0_5] : memref<36x288xf32, #tpu.memory_space<vmem>>, vector<4x288xf32>
    tpu.vector_store %arg8[%c8, %c0_5], %6 {strides = array<i32>} : memref<36x288xf32, #tpu.memory_space<vmem>>, vector<4x288xf32>,
    %8 = vector.extract_strided_slice %1 {offsets = [0, 18], sizes = [4, 288], strides = [1, 1]} : vector<4x326xf32> to vector<4x288xf32>
    %c12 = arith.constant 12 : index
    %c0_6 = arith.constant 0 : index
    %9 = vector.load %arg8[%c12, %c0_6] : memref<36x288xf32, #tpu.memory_space<vmem>>, vector<4x288xf32>
    tpu.vector_store %arg8[%c12, %c0_6], %8 {strides = array<i32>} : memref<36x288xf32, #tpu.memory_space<vmem>>, vector<4x288xf32>,
    %10 = vector.extract_strided_slice %1 {offsets = [0, 19], sizes = [4, 288], strides = [1, 1]} : vector<4x326xf32> to vector<4x288xf32>
    %c16 = arith.constant 16 : index
    %c0_7 = arith.constant 0 : index
    %11 = vector.load %arg8[%c16, %c0_7] : memref<36x288xf32, #tpu.memory_space<vmem>>, vector<4x288xf32>
    tpu.vector_store %arg8[%c16, %c0_7], %10 {strides = array<i32>} : memref<36x288xf32, #tpu.memory_space<vmem>>, vector<4x288xf32>,
    %12 = vector.extract_strided_slice %1 {offsets = [0, 20], sizes = [4, 288], strides = [1, 1]} : vector<4x326xf32> to vector<4x288xf32>
    %c20 = arith.constant 20 : index
    %c0_8 = arith.constant 0 : index
    %13 = vector.load %arg8[%c20, %c0_8] : memref<36x288xf32, #tpu.memory_space<vmem>>, vector<4x288xf32>
    tpu.vector_store %arg8[%c20, %c0_8], %12 {strides = array<i32>} : memref<36x288xf32, #tpu.memory_space<vmem>>, vector<4x288xf32>,
    %14 = vector.extract_strided_slice %1 {offsets = [0, 36], sizes = [4, 288], strides = [1, 1]} : vector<4x326xf32> to vector<4x288xf32>
    %c24 = arith.constant 24 : index
    %c0_9 = arith.constant 0 : index
    %15 = vector.load %arg8[%c24, %c0_9] : memref<36x288xf32, #tpu.memory_space<vmem>>, vector<4x288xf32>
    tpu.vector_store %arg8[%c24, %c0_9], %14 {strides = array<i32>} : memref<36x288xf32, #tpu.memory_space<vmem>>, vector<4x288xf32>,
    %16 = vector.extract_strided_slice %1 {offsets = [0, 37], sizes = [4, 288], strides = [1, 1]} : vector<4x326xf32> to vector<4x288xf32>
    %c28 = arith.constant 28 : index
    %c0_10 = arith.constant 0 : index
    %17 = vector.load %arg8[%c28, %c0_10] : memref<36x288xf32, #tpu.memory_space<vmem>>, vector<4x288xf32>
    tpu.vector_store %arg8[%c28, %c0_10], %16 {strides = array<i32>} : memref<36x288xf32, #tpu.memory_space<vmem>>, vector<4x288xf32>,
    %18 = vector.extract_strided_slice %1 {offsets = [0, 38], sizes = [4, 288], strides = [1, 1]} : vector<4x326xf32> to vector<4x288xf32>
    %c32 = arith.constant 32 : index
    %c0_11 = arith.constant 0 : index
    %19 = vector.load %arg8[%c32, %c0_11] : memref<36x288xf32, #tpu.memory_space<vmem>>, vector<4x288xf32>
    tpu.vector_store %arg8[%c32, %c0_11], %18 {strides = array<i32>} : memref<36x288xf32, #tpu.memory_space<vmem>>, vector<4x288xf32>,
    %c0_12 = arith.constant 0 : index
    %c0_13 = arith.constant 0 : index
    %20 = vector.load %arg2[%c0_12, %c0_13] : memref<8x36xf32, #tpu.memory_space<vmem>>, vector<8x36xf32>
    %c0_14 = arith.constant 0 : index
    %c0_15 = arith.constant 0 : index
    %21 = vector.load %arg8[%c0_14, %c0_15] : memref<36x288xf32, #tpu.memory_space<vmem>>, vector<36x288xf32>
    %cst = arith.constant dense<0.000000e+00> : vector<8x288xf32>
    %22 = tpu.matmul %20, %21, %cst {dimension_numbers = #tpu.dot_dimension_numbers<[1], [0], [0], [1], [0, 0, 1, 1], [], []>} : vector<8x36xf32>, vector<36x288xf32>, vector<8x288xf32> -> vector<8x288xf32>
    %c0_16 = arith.constant 0 : index
    %c0_17 = arith.constant 0 : index
    %23 = vector.load %arg3[%c0_16, %c0_17] : memref<8x1xf32, #tpu.memory_space<vmem>>, vector<8x1xf32>
    %24 = vector.broadcast %23 : vector<8x1xf32> to vector<8x288xf32>
    %25 = arith.addf %22, %24 : vector<8x288xf32>
    %cst_18 = arith.constant 0.000000e+00 : f32
    %26 = vector.broadcast %cst_18 : f32 to vector<8x288xf32>
    %27 = arith.maximumf %25, %26 : vector<8x288xf32>
    %28 = vector.shape_cast %27 : vector<8x288xf32> to vector<1x8x288xf32>
    %c0_19 = arith.constant 0 : index
    %c0_20 = arith.constant 0 : index
    %c0_21 = arith.constant 0 : index
    %29 = vector.load %arg5[%c0_19, %c0_20, %c0_21] : memref<1x8x288xf32, #tpu.memory_space<vmem>>, vector<1x8x288xf32>
    tpu.vector_store %arg5[%c0_19, %c0_20, %c0_21], %28 {strides = array<i32>} : memref<1x8x288xf32, #tpu.memory_space<vmem>>, vector<1x8x288xf32>,
    %c0_22 = arith.constant 0 : index
    %c0_23 = arith.constant 0 : index
    %30 = vector.load %arg4[%c0_22, %c0_23] : memref<1x288xf32, #tpu.memory_space<vmem>>, vector<1x288xf32>
    %31 = vector.broadcast %30 : vector<1x288xf32> to vector<8x288xf32>
    %32 = arith.mulf %27, %31 : vector<8x288xf32>
    %cst_24 = arith.constant dense<0.000000e+00> : vector<8xf32>
    %33 = vector.multi_reduction <add>, %32, %cst_24 [1] : vector<8x288xf32> to vector<8xf32>
    %34 = vector.shape_cast %33 : vector<8xf32> to vector<8x1xf32>
    %35 = vector.shape_cast %34 : vector<8x1xf32> to vector<1x8x1xf32>
    %c0_25 = arith.constant 0 : index
    %c0_26 = arith.constant 0 : index
    %c0_27 = arith.constant 0 : index
    %36 = vector.load %arg6[%c0_25, %c0_26, %c0_27] : memref<1x8x1xf32, #tpu.memory_space<vmem>>, vector<1x8x1xf32>
    tpu.vector_store %arg6[%c0_25, %c0_26, %c0_27], %35 {strides = array<i32>} : memref<1x8x1xf32, #tpu.memory_space<vmem>>, vector<1x8x1xf32>,
    %37 = arith.mulf %32, %32 : vector<8x288xf32>
    %cst_28 = arith.constant dense<0.000000e+00> : vector<8xf32>
    %38 = vector.multi_reduction <add>, %37, %cst_28 [1] : vector<8x288xf32> to vector<8xf32>
    %39 = vector.shape_cast %38 : vector<8xf32> to vector<8x1xf32>
    %40 = vector.shape_cast %39 : vector<8x1xf32> to vector<1x8x1xf32>
    %c0_29 = arith.constant 0 : index
    %c0_30 = arith.constant 0 : index
    %c0_31 = arith.constant 0 : index
    %41 = vector.load %arg7[%c0_29, %c0_30, %c0_31] : memref<1x8x1xf32, #tpu.memory_space<vmem>>, vector<1x8x1xf32>
    tpu.vector_store %arg7[%c0_29, %c0_30, %c0_31], %40 {strides = array<i32>} : memref<1x8x1xf32, #tpu.memory_space<vmem>>, vector<1x8x1xf32>,
    return
  }
  func.func @transform_0(%arg0: i32) -> (i32, i32, i32) {
    %c0_i32 = arith.constant 0 : i32
    %c0_i32_0 = arith.constant 0 : i32
    %c0_i32_1 = arith.constant 0 : i32
    return %arg0, %c0_i32, %c0_i32_0 : i32, i32, i32
  }
  func.func @transform_1(%arg0: i32) -> (i32, i32) {
    %c0_i32 = arith.constant 0 : i32
    %c0_i32_0 = arith.constant 0 : i32
    %c0_i32_1 = arith.constant 0 : i32
    return %c0_i32, %c0_i32_0 : i32, i32
  }
  func.func @transform_2(%arg0: i32) -> (i32, i32) {
    %c0_i32 = arith.constant 0 : i32
    %c0_i32_0 = arith.constant 0 : i32
    %c0_i32_1 = arith.constant 0 : i32
    return %c0_i32, %c0_i32_0 : i32, i32
  }
  func.func @transform_3(%arg0: i32) -> (i32, i32) {
    %c0_i32 = arith.constant 0 : i32
    %c0_i32_0 = arith.constant 0 : i32
    %c0_i32_1 = arith.constant 0 : i32
    return %c0_i32, %c0_i32_0 : i32, i32
  }
  func.func @transform_4(%arg0: i32) -> (i32, i32, i32) {
    %c0_i32 = arith.constant 0 : i32
    %c0_i32_0 = arith.constant 0 : i32
    %c0_i32_1 = arith.constant 0 : i32
    return %arg0, %c0_i32, %c0_i32_0 : i32, i32, i32
  }
  func.func @transform_5(%arg0: i32) -> (i32, i32, i32) {
    %c0_i32 = arith.constant 0 : i32
    %c0_i32_0 = arith.constant 0 : i32
    %c0_i32_1 = arith.constant 0 : i32
    return %arg0, %c0_i32, %c0_i32_0 : i32, i32, i32
  }
  func.func @transform_6(%arg0: i32) -> (i32, i32, i32) {
    %c0_i32 = arith.constant 0 : i32
    %c0_i32_0 = arith.constant 0 : i32
    %c0_i32_1 = arith.constant 0 : i32
    return %arg0, %c0_i32, %c0_i32_0 : i32, i32, i32
  }
}

module attributes {stable_mosaic.version = 11 : i64} {
  func.func @_bn_apply_kernel(%arg0: i32, %arg1: memref<1x8x16x18xf32, #tpu.memory_space<vmem>>, %arg2: memref<8x1xf32, #tpu.memory_space<vmem>>, %arg3: memref<8x1xf32, #tpu.memory_space<vmem>>, %arg4: memref<1x8x16x16xf32, #tpu.memory_space<vmem>>) attributes {dimension_semantics = [#tpu.dimension_semantics<parallel>], iteration_bounds = array<i64: 2>, scalar_prefetch = 0 : i64, scratch_operands = 0 : i64, tpu.core_type = #tpu.core_type<tc>, window_params = [{transform_indices = @transform_0, window_bounds = array<i64: 1, 8, 16, 18>}, {pipeline_mode = #tpu.pipeline_mode<synchronous>, transform_indices = @transform_1, window_bounds = array<i64: 8, 1>}, {pipeline_mode = #tpu.pipeline_mode<synchronous>, transform_indices = @transform_2, window_bounds = array<i64: 8, 1>}, {transform_indices = @transform_3, window_bounds = array<i64: 1, 8, 16, 16>}]} {
    %c0 = arith.constant 0 : index
    %c0_0 = arith.constant 0 : index
    %c0_1 = arith.constant 0 : index
    %c0_2 = arith.constant 0 : index
    %0 = vector.load %arg1[%c0, %c0_0, %c0_1, %c0_2] : memref<1x8x16x18xf32, #tpu.memory_space<vmem>>, vector<1x8x16x18xf32>
    %1 = vector.shape_cast %0 : vector<1x8x16x18xf32> to vector<8x16x18xf32>
    %2 = vector.extract_strided_slice %1 {offsets = [0, 0, 0], sizes = [8, 16, 16], strides = [1, 1, 1]} : vector<8x16x18xf32> to vector<8x16x16xf32>
    %c0_3 = arith.constant 0 : index
    %c0_4 = arith.constant 0 : index
    %3 = vector.load %arg2[%c0_3, %c0_4] : memref<8x1xf32, #tpu.memory_space<vmem>>, vector<8x1xf32>
    %4 = vector.shape_cast %3 : vector<8x1xf32> to vector<8x1x1xf32>
    %c0_5 = arith.constant 0 : index
    %c0_6 = arith.constant 0 : index
    %5 = vector.load %arg3[%c0_5, %c0_6] : memref<8x1xf32, #tpu.memory_space<vmem>>, vector<8x1xf32>
    %6 = vector.shape_cast %5 : vector<8x1xf32> to vector<8x1x1xf32>
    %7 = vector.broadcast %4 : vector<8x1x1xf32> to vector<8x16x16xf32>
    %8 = arith.mulf %2, %7 : vector<8x16x16xf32>
    %9 = vector.broadcast %6 : vector<8x1x1xf32> to vector<8x16x16xf32>
    %10 = arith.addf %8, %9 : vector<8x16x16xf32>
    %11 = vector.shape_cast %10 : vector<8x16x16xf32> to vector<1x8x16x16xf32>
    %c0_7 = arith.constant 0 : index
    %c0_8 = arith.constant 0 : index
    %c0_9 = arith.constant 0 : index
    %c0_10 = arith.constant 0 : index
    %12 = vector.load %arg4[%c0_7, %c0_8, %c0_9, %c0_10] : memref<1x8x16x16xf32, #tpu.memory_space<vmem>>, vector<1x8x16x16xf32>
    tpu.vector_store %arg4[%c0_7, %c0_8, %c0_9, %c0_10], %11 {strides = array<i32>} : memref<1x8x16x16xf32, #tpu.memory_space<vmem>>, vector<1x8x16x16xf32>,
    return
  }
  func.func @transform_0(%arg0: i32) -> (i32, i32, i32, i32) {
    %c0_i32 = arith.constant 0 : i32
    %c0_i32_0 = arith.constant 0 : i32
    %c0_i32_1 = arith.constant 0 : i32
    %c0_i32_2 = arith.constant 0 : i32
    return %arg0, %c0_i32, %c0_i32_0, %c0_i32_1 : i32, i32, i32, i32
  }
  func.func @transform_1(%arg0: i32) -> (i32, i32) {
    %c0_i32 = arith.constant 0 : i32
    %c0_i32_0 = arith.constant 0 : i32
    %c0_i32_1 = arith.constant 0 : i32
    return %c0_i32, %c0_i32_0 : i32, i32
  }
  func.func @transform_2(%arg0: i32) -> (i32, i32) {
    %c0_i32 = arith.constant 0 : i32
    %c0_i32_0 = arith.constant 0 : i32
    %c0_i32_1 = arith.constant 0 : i32
    return %c0_i32, %c0_i32_0 : i32, i32
  }
  func.func @transform_3(%arg0: i32) -> (i32, i32, i32, i32) {
    %c0_i32 = arith.constant 0 : i32
    %c0_i32_0 = arith.constant 0 : i32
    %c0_i32_1 = arith.constant 0 : i32
    %c0_i32_2 = arith.constant 0 : i32
    return %arg0, %c0_i32, %c0_i32_0, %c0_i32_1 : i32, i32, i32, i32
  }
}

</mosaic_0001>

<bundles_post_ra>
// kernel: base_conv2d.3
= control target key start
LH: loop header
LB: loop body
LE: loop exit
PB: predicated region body
PF: predicated region fallthrough
CT: control target
= control target key end

     0   :  { %8 = vsyncpa [#allocation3], 0  ;;  %s853_s0 = inlined_call_operand.vmem [shape: f32[2,8,16,18], index: 0, kind: input, shape index: {}]   ;;  %s854_s1 = inlined_call_operand.vmem [shape: f32[8,1], index: 1, kind: input, shape index: {}]   ;;  %s855_s2 = inlined_call_operand.vmem [shape: f32[8,1], index: 2, kind: input, shape index: {}]   ;;  %s856_s3 = inlined_call_operand.hbm [shape: f32[2,8,16,16], index: 3, kind: output, shape index: {}]  }
   0x1   :  { %10 = vsyncpa [#allocation3 + $0x1], 0  ;;  %s688_s12 = smov 0   ;;  %s690_s13 = smov 0  }
   0x2   :  { %s692_s14 = smov 0   ;;  %s694_s15 = smov 0  }
   0x3 LB: > { %s709_s16 = sadd.s32 4294967295, %s661_s15   ;;  %s540_s17 = sadd.s32 4294967294, %s661_s15   ;;  %s661_s15 = sphi %s694_s15, %s862_s15   ;;  %s657_s14 = sphi %s692_s14, %s861_s14   ;;  %s653_s13 = sphi %s690_s13, %s860_s13   ;;  %s649_s12 = sphi %s688_s12, %s859_s12  }
   0x4   : > { %s713_s18 = sadd.s32 1, %s661_s15   ;;  %s91_s19 = sadd.s32 1, %s657_s14 }
   0x5   : > { %s88_s20 = ssub.s32 %s661_s15, %s713_s18  ;;  %p101_p0 = scmp.ne.s32.totalorder %s657_s14, %s653_s13 }
   0x6   : > { %p89_p1 = scmp.eq.s32.totalorder %s88_s20, 0  ;;  %p102_p2 = scmp.eq.s32.totalorder %s709_s16, 1 }
   0x7   : > { %p107_p3 = scmp.ne.s32.totalorder %s653_s13, %s649_s12  ;;  %p108_p4 = scmp.eq.s32.totalorder %s540_s17, 1 }
   0x8   : > { %s724_s21 = scalar_select %p89_p1, %s657_s14, %s91_s19  }
   0x9   : > { %p726_p5 = por %p102_p2, %p101_p0  ;;  %p730_p6 = por %p108_p4, %p107_p3 }
   0xa   : > { %p543_p7 = scmp.ge.s32.totalorder %s661_s15, 1  ;;  %p140_p8 = scmp.lt.s32.totalorder %s661_s15, 3 }
   0xc   : > { %p141_p9 = pnand %p543_p7, %p140_p8 }
   0xd   : > { %p164_p10 = scmp.lt.s32.totalorder (!%p141_p9), %s709_s16, 1  ;;  %s161_s30 = sand.u32 (!%p141_p9), 1, %s653_s13  }
   0xe   : > { %144 = sbr.rel (%p141_p9) target bundleno = 202 (0xca), region = 32  ;;  %s544_s7 = sshll.u32 (!%p141_p9), %s161_s30, 7 }
   0xf   : > { %s756_s8 = scalar_lea.vmem (!%p141_p9), [#allocation2], %s544_s7  ;;  %s553_s9 = sshll.u32 (!%p141_p9), %s709_s16, 11 }
  0x10   : > { %s478_s10 = sshll.u32 (!%p141_p9), %s756_s8, 4  ;;  %s799_s19 = scalar_lea.hbm (!%p141_p9), %s856_s3, %s553_s9  ;;  %s801_s10 = int_to_ptr.vmem [resolvable:$true] %s478_s10 }
  0x11   : > { %s601_s20 = scalar_lea.vmem (!%p141_p9), %s801_s10, 2048  ;;  %s665_s24 = smov (!%p141_p9), [#allocation2]  }
  0x12   : > { %p602_p11 = scmp.ne.s32.totalorder (!%p141_p9), %s801_s10, %s601_s20  ;;  %s605_s25 = sshll.u32 (!%p141_p9), %s665_s24, 4  ;;  %s606_s25 = int_to_ptr.vmem [resolvable:$false] %s605_s25 }
  0x13   : > { %v191_v0 = vlaneseq  ;;  %v663_v1 = vmov 0   ;;  %v664_v2 = vmov 1966171168   ;;  %v185_v4 = vld [vmem:[%s854_s1] sm:$0xff]  ;;  %s165_s28 = scalar_select %p164_p10, %s709_s16, 1  ;;  %vm447_vm0 = vcmask 130048  }
  0x14   : > { %597 = vset.pattern.permute.xlu0 %v663_v1  ;;  %v189_v3 = vunpack.c.l.s4 %v664_v2  ;;  %598 = vset.pattern.permute.xlu1 %v663_v1  ;;  %v187_v7 = vcombine.high %v185_v4, %v185_v4  ;;  %v236_v8 = vld [vmem:[%s855_s2] sm:$0xff]  ;;  %s813_s16 = scalar_lea.sflag [#allocation3], %s161_s30  ;;  %p603_p12 = pnand %p602_p11, %p726_p5 }
  0x15   : > { %v192_v5 = vshrl.u32 %v191_v0, 7  ;;  %v238_v31 = vcombine.high %v236_v8, %v236_v8  ;;  %s552_s29 = sshll.u32 %s165_s28, 7  ;;  %s607_s26 = scalar_lea.vmem %s606_s25, 4096 }
  0x16   : > { %v190_v6 = vunpack.c.0.s8 %v189_v3  ;;  %s748_s6 = scalar_lea.vmem %s853_s0, %s552_s29  ;;  %p604_p13 = pneg %p603_p12 }
  0x17   : > { %v289_v11 = vsub.s32 0, %v192_v5  ;;  %v171_v56 = vld [vmem:[%s748_s6 + $0x10] sm:$0xff]  ;;  %v172_v57 = vld [vmem:[%s748_s6 + $0x18] sm:$0xff]  ;;  %v169_v0 = vld [vmem:[%s748_s6] sm:$0xff]  ;;  %p608_p0 = scmp.lt.s32.totalorder %s801_s10, %s606_s25  ;;  %p609_p1 = scmp.lt.s32.totalorder %s607_s26, %s601_s20 }
  0x18   : > { %v193_v9 = vsub.s32 %v190_v6, %v192_v5  ;;  %v170_v1 = vld [vmem:[%s748_s6 + $0x8] sm:$0xff]  ;;  %v173_v6 = vld [vmem:[%s748_s6 + $0x20] sm:$0xff] }
  0x19   : > { %p610_p2 = por %p609_p1, %p608_p0 }
  0x1a   : > { %v194_v10 = vrot.slane %v185_v4, %v193_v9  ;;  %v201_v12 = vrot.slane %v187_v7, %v193_v9  ;;  %v245_v13 = vrot.slane %v236_v8, %v193_v9  ;;  %v252_v36 = vrot.slane %v238_v31, %v193_v9  ;;  %v174_v7 = vld [vmem:[%s748_s6 + $0x28] sm:$0xff] }
  0x1b   : > { %v182_v31 = vld [vmem:[%s748_s6 + $0x68] sm:$0xff]  ;;  %p611_p3 = pnand %p610_p2, %p604_p13 }
  0x1c   : > { %v210_v14 = vrot.slane %v194_v10, %v193_v9  ;;  %v202_v15 = vcombine.high %v194_v10, %v194_v10  ;;  %v217_v16 = vrot.slane %v201_v12, %v193_v9  ;;  %v203_v17 = vcombine.high %v201_v12, %v201_v12  ;;  %v176_v12 = vld [vmem:[%s748_s6 + $0x38] sm:$0xff] }
  0x1d   : > { %v253_v21 = vcombine.high %v245_v13, %v245_v13  ;;  %v261_v33 = vrot.slane %v245_v13, %v193_v9  ;;  %v254_v41 = vcombine.high %v252_v36, %v252_v36  ;;  %v268_v43 = vrot.slane %v252_v36, %v193_v9 }
  0x1e   : > { %v290_v18 = vrot.slane %v210_v14, %v289_v11  ;;  %v232_v19 = vcombine.high %v210_v14, %v210_v14  ;;  %v231_v20 = vrot.slane %v203_v17, %v193_v9  ;;  %v306_v23 = vrot.slane %v217_v16, %v289_v11  ;;  %v178_v17 = vld [vmem:[%s748_s6 + $0x48] sm:$0xff] }
  0x1f   : > { %v224_v24 = vrot.slane %v202_v15, %v193_v9  ;;  %v275_v26 = vrot.slane %v253_v21, %v193_v9  ;;  %v233_v28 = vcombine.high %v217_v16, %v217_v16  ;;  %v370_v37 = vrot.slane %v261_v33, %v289_v11  ;;  %v177_v16 = vld [vmem:[%s748_s6 + $0x40] sm:$0xff] }
  0x20   : > { %320 = vperm.xlu0 %597, %v290_v18   ;;  %v298_v22 = vrot.slane %v232_v19, %v289_v11  ;;  %v310_v25 = vrot.slane %v231_v20, %v289_v11  ;;  %v235_v35 = vcombine.high %v231_v20, %v231_v20  ;;  %v283_v38 = vcombine.high %v261_v33, %v261_v33 }
  0x21   : > { %v294_v27 = vrot.slane %v224_v24, %v289_v11  ;;  %v374_v29 = vrot.slane %v275_v26, %v289_v11  ;;  %v234_v30 = vcombine.high %v224_v24, %v224_v24  ;;  %v314_v32 = vrot.slane %v233_v28, %v289_v11  ;;  %v180_v24 = vld [vmem:[%s748_s6 + $0x58] sm:$0xff] }
  0x22   : > { %328 = vperm.xlu1 %598, %v298_v22   ;;  %v318_v39 = vrot.slane %v235_v35, %v289_v11  ;;  %v285_v40 = vcombine.high %v275_v26, %v275_v26  ;;  %v378_v42 = vrot.slane %v283_v38, %v289_v11  ;;  %v282_v45 = vrot.slane %v254_v41, %v193_v9  ;;  %v184_v38 = vld [vmem:[%s748_s6 + $0x78] sm:$0xff] }
  0x23   : > { %v302_v34 = vrot.slane %v234_v30, %v289_v11  ;;  %v386_v46 = vrot.slane %v268_v43, %v289_v11  ;;  %v284_v47 = vcombine.high %v268_v43, %v268_v43  ;;  %v181_v30 = vld [vmem:[%s748_s6 + $0x60] sm:$0xff] }
  0x24   : > { %336 = vperm.xlu0 %597, %v306_v23   ;;  %v382_v44 = vrot.slane %v285_v40, %v289_v11  ;;  %v390_v48 = vrot.slane %v282_v45, %v289_v11  ;;  %v286_v49 = vcombine.high %v282_v45, %v282_v45  ;;  %v179_v23 = vld [vmem:[%s748_s6 + $0x50] sm:$0xff] }
  0x25   : > { %v394_v50 = vrot.slane %v284_v47, %v289_v11 }
  0x26   : > { %340 = vperm.xlu1 %598, %v310_v25   ;;  %v398_v51 = vrot.slane %v286_v49, %v289_v11  ;;  %v175_v11 = vld [vmem:[%s748_s6 + $0x30] sm:$0xff] }
  0x28   : > { %324 = vperm.xlu0 %597, %v294_v27  }
  0x2a   : > { %404 = vperm.xlu1 %598, %v374_v29  }
  0x2c   : > { %344 = vperm.xlu0 %597, %v314_v32  }
  0x2e   : > { %332 = vperm.xlu1 %598, %v302_v34  }
  0x30   : > { %400 = vperm.xlu0 %597, %v370_v37   ;;  %v183_v37 = vld [vmem:[%s748_s6 + $0x70] sm:$0xff] }
  0x32   : > { %348 = vperm.xlu1 %598, %v318_v39  }
  0x34   : > { %408 = vperm.xlu0 %597, %v378_v42  }
  0x36   : > { %412 = vperm.xlu1 %598, %v382_v44  }
  0x38   : > { %416 = vperm.xlu0 %597, %v386_v46  }
  0x3a   : > { %420 = vperm.xlu1 %598, %v390_v48  }
  0x3c   : > { %424 = vperm.xlu0 %597, %v394_v50  }
  0x3e   : > { %428 = vperm.xlu1 %598, %v398_v51  }
  0x9b   : > { %v321_v52 = vpop.permute.xlu0 %320 }
  0x9c   : > { %v351_v4 = vmul.f32 %v321_v52, %v169_v0  ;;  %v352_v5 = vmul.f32 %v321_v52, %v170_v1 }
  0x9d   : > { %v329_v53 = vpop.permute.xlu1 %328 }
  0x9e   : > { %v355_v14 = vmul.f32 %v329_v53, %v173_v6  ;;  %v356_v15 = vmul.f32 %v329_v53, %v174_v7 }
  0x9f   : > { %v337_v54 = vpop.permute.xlu0 %336 }
  0xa0   : > { %v359_v26 = vmul.f32 %v337_v54, %v177_v16  ;;  %v360_v27 = vmul.f32 %v337_v54, %v178_v17 }
  0xa1   : > { %v341_v55 = vpop.permute.xlu1 %340 }
  0xa2   : > { %v361_v33 = vmul.f32 %v341_v55, %v179_v23  ;;  %v362_v34 = vmul.f32 %v341_v55, %v180_v24 }
  0xa3   : > { %v325_v58 = vpop.permute.xlu0 %324 }
  0xa4   : > { %v353_v59 = vmul.f32 %v325_v58, %v171_v56  ;;  %v354_v60 = vmul.f32 %v325_v58, %v172_v57 }
  0xa5   : > { %v405_v61 = vpop.permute.xlu1 %404 }
  0xa6   : > { %v433_v62 = vadd.f32 %v405_v61, %v353_v59  ;;  %v434_v63 = vadd.f32 %v405_v61, %v354_v60 }
  0xa7   : > { %v345_v2 = vpop.permute.xlu0 %344 }
  0xa8   : > { %450 = vst.msk [vmem:[%s756_s8 + $0x10] sm:$0xff] %vm447_vm0, %v433_v62  ;;  %451 = vst.msk [vmem:[%s756_s8 + $0x18] sm:$0xff] %vm447_vm0, %v434_v63  ;;  %v363_v40 = vmul.f32 %v345_v2, %v181_v30  ;;  %v364_v41 = vmul.f32 %v345_v2, %v182_v31 }
  0xa9   : > { %v333_v3 = vpop.permute.xlu1 %332 }
  0xaa   : > { %v357_v19 = vmul.f32 %v333_v3, %v175_v11  ;;  %v358_v20 = vmul.f32 %v333_v3, %v176_v12 }
  0xab   : > { %v401_v8 = vpop.permute.xlu0 %400 }
  0xac   : > { %v431_v9 = vadd.f32 %v401_v8, %v351_v4  ;;  %v432_v10 = vadd.f32 %v401_v8, %v352_v5 }
  0xad   : > { %v349_v13 = vpop.permute.xlu1 %348 }
  0xae   : > { %448 = vst.msk [vmem:[%s756_s8] sm:$0xff] %vm447_vm0, %v431_v9  ;;  %449 = vst.msk [vmem:[%s756_s8 + $0x8] sm:$0xff] %vm447_vm0, %v432_v10  ;;  %v365_v45 = vmul.f32 %v349_v13, %v183_v37  ;;  %v366_v46 = vmul.f32 %v349_v13, %v184_v38 }
  0xaf   : > { %v409_v18 = vpop.permute.xlu0 %408 }
  0xb0   : > { %v435_v21 = vadd.f32 %v409_v18, %v355_v14  ;;  %v436_v22 = vadd.f32 %v409_v18, %v356_v15 }
  0xb1   : > { %v413_v25 = vpop.permute.xlu1 %412 }
  0xb2   : > { %452 = vst.msk [vmem:[%s756_s8 + $0x20] sm:$0xff] %vm447_vm0, %v435_v21  ;;  %453 = vst.msk [vmem:[%s756_s8 + $0x28] sm:$0xff] %vm447_vm0, %v436_v22  ;;  %v437_v28 = vadd.f32 %v413_v25, %v357_v19  ;;  %v438_v29 = vadd.f32 %v413_v25, %v358_v20 }
  0xb3   : > { %v417_v32 = vpop.permute.xlu0 %416 }
  0xb4   : > { %454 = vst.msk [vmem:[%s756_s8 + $0x30] sm:$0xff] %vm447_vm0, %v437_v28  ;;  %455 = vst.msk [vmem:[%s756_s8 + $0x38] sm:$0xff] %vm447_vm0, %v438_v29  ;;  %v439_v35 = vadd.f32 %v417_v32, %v359_v26  ;;  %v440_v36 = vadd.f32 %v417_v32, %v360_v27 }
  0xb5   : > { %v421_v39 = vpop.permute.xlu1 %420 }
  0xb6   : > { %456 = vst.msk [vmem:[%s756_s8 + $0x40] sm:$0xff] %vm447_vm0, %v439_v35  ;;  %457 = vst.msk [vmem:[%s756_s8 + $0x48] sm:$0xff] %vm447_vm0, %v440_v36  ;;  %v441_v42 = vadd.f32 %v421_v39, %v361_v33  ;;  %v442_v43 = vadd.f32 %v421_v39, %v362_v34 }
  0xb7   : > { %v425_v44 = vpop.permute.xlu0 %424 }
  0xb8   : > { %458 = vst.msk [vmem:[%s756_s8 + $0x50] sm:$0xff] %vm447_vm0, %v441_v42  ;;  %459 = vst.msk [vmem:[%s756_s8 + $0x58] sm:$0xff] %vm447_vm0, %v442_v43  ;;  %v443_v47 = vadd.f32 %v425_v44, %v363_v40  ;;  %v444_v48 = vadd.f32 %v425_v44, %v364_v41 }
  0xb9   : > { %v429_v49 = vpop.permute.xlu1 %428 }
  0xba   : > { %460 = vst.msk [vmem:[%s756_s8 + $0x60] sm:$0xff] %vm447_vm0, %v443_v47  ;;  %461 = vst.msk [vmem:[%s756_s8 + $0x68] sm:$0xff] %vm447_vm0, %v444_v48  ;;  %v445_v50 = vadd.f32 %v429_v49, %v365_v45  ;;  %v446_v51 = vadd.f32 %v429_v49, %v366_v46 }
  0xbc   : > { %462 = vst.msk [vmem:[%s756_s8 + $0x70] sm:$0xff] %vm447_vm0, %v445_v50  ;;  %463 = vst.msk [vmem:[%s756_s8 + $0x78] sm:$0xff] %vm447_vm0, %v446_v51 }
  0xbd   : > { %614 = shalt.err (!%p611_p3)
}
  0xbe   : > { %s615_s27 = scalar_lea.hbm %s799_s19, 2048  ;;  %s619_s30 = scalar_lea.hbm %s856_s3, 4096 }
  0xbf   : > { %p616_p4 = scmp.ne.s32.totalorder %s799_s19, %s615_s27  ;;  %p620_p9 = scmp.lt.s32.totalorder %s799_s19, %s856_s3 }
  0xc0   : > { %p621_p10 = scmp.lt.s32.totalorder %s619_s30, %s615_s27 }
  0xc1   : > { %p617_p7 = pnand %p616_p4, %p726_p5 }
  0xc2   : > { %p622_p11 = por %p621_p10, %p620_p9 }
  0xc3   : > { %p618_p8 = pneg %p617_p7 }
  0xc5   : > { %p623_p12 = pnand %p622_p11, %p618_p8 }
  0xc7   : > { %626 = shalt.err (!%p623_p12)
}
  0xc8   : > { %s666_s6 = smov 128   ;;  %s667_s7 = smov 8  }
  0xc9   : > { %554 = dma.vmem_to_hbm [thread:$0]  (%p726_p5), %s801_s10, 2048, %s799_s19, %s813_s16, %s666_s6, %s666_s6, %s667_s7  }
  0xca PF: > { %p560_p13 = scmp.ge.s32.totalorder %s661_s15, 2  ;;  %s493_s8 = sand.u32 1, %s649_s12  }
  0xcb   : > { %s494_s9 = scalar_lea.sflag [#allocation3], %s493_s8 }
  0xcc   : > { %p557_p0 = pnand %p560_p13, %p730_p6 }
  0xce   : > { %p558_p1 = pneg %p557_p0 }
  0xd0   : > { %644 = dma.done.wait (%p558_p1), %s494_s9, 2048  }
  0xd1   : > { %646 = vsyncadd (%p558_p1), %s494_s9, 4294965248  ;;  %p13_p2 = scmp.ge.s32.totalorder %s713_s18, 4   ;;  %s859_s12 = smov %s653_s13 }
  0xd2   : > { %s860_s13 = smov %s657_s14  ;;  %s861_s14 = smov %s724_s21 }
  0xd3   : > { %s862_s15 = smov %s713_s18  ;;  %15 = sbr.rel (!%p13_p2) target bundleno = 3 (0x3), region = 67 }
  0xd8   :  { %499 = vsyncpa [#allocation3], 1 }
  0xd9   :  { %501 = vsyncpa [#allocation3 + $0x1], 1 }

// kernel: base_conv2d.2
= control target key start
LH: loop header
LB: loop body
LE: loop exit
PB: predicated region body
PF: predicated region fallthrough
CT: control target
= control target key end

     0   :  { %s857_s21 = smov 0   ;;  %s918_s0 = inlined_call_operand.vmem [shape: f32[2,4,326], index: 0, kind: input, shape index: {}]   ;;  %s919_s1 = inlined_call_operand.vmem [shape: f32[8,36], index: 1, kind: input, shape index: {}]   ;;  %s920_s2 = inlined_call_operand.vmem [shape: f32[8,1], index: 2, kind: input, shape index: {}]   ;;  %s921_s3 = inlined_call_operand.vmem [shape: f32[1,288], index: 3, kind: input, shape index: {}]   ;;  %s922_s4 = inlined_call_operand.vmem [shape: f32[2,8,288], index: 4, kind: output, shape index: {0}]   ;;  %s923_s5 = inlined_call_operand.vmem [shape: f32[2,8,1], index: 5, kind: output, shape index: {1}]   ;;  %s924_s6 = inlined_call_operand.vmem [shape: f32[2,8,1], index: 6, kind: output, shape index: {2}]  }
   0x1 LB: > { %s743_s22 = sadd.s32 4294967295, %s809_s21   ;;  %p747_p0 = scmp.ge.s32.totalorder %s809_s21, 1  ;;  %s809_s21 = sphi %s857_s21, %s17_s21  }
   0x2   : > { %p217_p1 = scmp.lt.s32.totalorder %s809_s21, 3 }
   0x4   : > { %p218_p2 = pnand %p747_p0, %p217_p1 }
   0x5   : > { %p255_p3 = scmp.lt.s32.totalorder (!%p218_p2), %s743_s22, 1  ;;  %s812_s27 = smov (!%p218_p2), 90  }
   0x6   : > { %221 = sbr.rel (%p218_p2) target bundleno = 532 (0x214), region = 36  ;;  %s813_s28 = smov (!%p218_p2), 92  }
   0x7   : > { %s814_s29 = smov (!%p218_p2), 91   ;;  %s815_s30 = smov (!%p218_p2), 109  }
   0x8   : > { %s816_s7 = smov (!%p218_p2), 108   ;;  %s817_s8 = smov (!%p218_p2), 126  }
   0x9   : > { %s818_s9 = smov (!%p218_p2), 110   ;;  %s819_s10 = smov (!%p218_p2), 127  }
   0xb   : > { %v811_v0 = vmov 0.0   ;;  %s926_s22 = smov (!%p255_p3, %s743_s22), 1  ;;  %vm281_vm0 = vcmask 257024   ;;  %vm820_vm1 = vmmov 0   ;;  %v821_v6 = vmov 0   ;;  %v422_v7 = vld [vmem:[%s920_s2] sm:$0xff] }
   0xc   : > { %765 = vmatprep.subr.mxu1 %v811_v0  ;;  %506 = vmatprep.mubr.f32.mxu0 %v811_v0  ;;  %s778_s23 = smul.u32 12, %s926_s22  ;;  %vm367_vm2 = vcmask 752640   ;;  %vm397_vm3 = vcmask 736256   ;;  %vm432_vm4 = vcmask 1043456   ;;  %vm299_vm5 = vcmask 261124   ;;  %v406_v60 = vld [vmem:[%s919_s1] sm:$0xff] }
   0xd   : > { %775 = vmatprep.mubr.msk.f32.mxu1 %vm820_vm1, %v811_v0  ;;  %799 = vset.pattern.permute.xlu0 %v821_v6  ;;  %vm382_vm6 = vcmask 744448   ;;  %vm337_vm7 = vcmask 891904   ;;  %vm352_vm8 = vcmask 883712   ;;  %vm307_vm9 = vcmask 1031168   ;;  %s779_s15 = smul.u32 24, %s926_s22 }
   0xe   : > { %s259_s26 = scalar_lea.vmem %s918_s0, %s778_s23  ;;  %vm322_vm10 = vcmask 900096   ;;  %vm291_vm11 = vcmask 1039360   ;;  %vm428_vm12 = vcmask 293888   ;;  %vm588_vm13 = vcmask 261120   ;;  %s750_s23 = sshll.u32 %s926_s22, 3 }
   0xf   : > { %v274_v1 = vld [vmem:[%s259_s26 + $0x8] sm:$0xf]  ;;  %v273_v2 = vld [vmem:[%s259_s26] sm:$0xff]  ;;  %s264_s20 = scalar_lea.vmem %s922_s4, %s779_s15  ;;  %s268_s26 = scalar_lea.vmem %s923_s5, %s750_s23  ;;  %vm615_vm14 = vcmask 7168  }
  0x10   : > { %395 = vrot.lane.b32.xlu0 %v274_v1, %s812_s27  ;;  %279 = vst [vmem:[#allocation2] sm:$0xf] %v273_v2  ;;  %391 = vrot.lane.b32.xlu1 %v273_v2, %s812_s27  ;;  %v277_v3 = vcombine.high %v273_v2, %v273_v2  ;;  %282 = vst.msk [vmem:[#allocation2 + $0x10] sm:$0xf] %vm281_vm0, %v274_v1  ;;  %v284_v4 = vcombine.low %v274_v1, %v274_v1 }
  0x11   : > { %v283_v5 = vcombine.low %v273_v2, %v273_v2 }
  0x12   : > { %280 = vst [vmem:[#allocation2 + $0x8] sm:$0xf] %v277_v3 }
  0x14   : > { %365 = vrot.lane.b32.xlu0 %v274_v1, %s813_s28  ;;  %378 = vrot.lane.b32.xlu1 %v273_v2, %s814_s29 }
  0x18   : > { %363 = vrot.lane.b32.xlu1 %v277_v3, %s813_s28  ;;  %393 = vrot.lane.b32.xlu0 %v277_v3, %s812_s27 }
  0x1c   : > { %361 = vrot.lane.b32.xlu1 %v273_v2, %s813_s28  ;;  %380 = vrot.lane.b32.xlu0 %v284_v4, %s814_s29 }
  0x20   : > { %333 = vrot.lane.b32.xlu1 %v277_v3, %s815_s30  ;;  %376 = vrot.lane.b32.xlu0 %v283_v5, %s814_s29  ;;  %s272_s29 = scalar_lea.vmem %s924_s6, %s750_s23 }
  0x24   : > { %348 = vrot.lane.b32.xlu1 %v273_v2, %s816_s7  ;;  %335 = vrot.lane.b32.xlu0 %v274_v1, %s815_s30 }
  0x28   : > { %331 = vrot.lane.b32.xlu1 %v273_v2, %s815_s30  ;;  %350 = vrot.lane.b32.xlu0 %v284_v4, %s816_s7 }
  0x2c   : > { %303 = vrot.lane.b32.xlu1 %v277_v3, %s817_s8  ;;  %346 = vrot.lane.b32.xlu0 %v283_v5, %s816_s7 }
  0x30   : > { %318 = vrot.lane.b32.xlu1 %v273_v2, %s818_s9  ;;  %305 = vrot.lane.b32.xlu0 %v274_v1, %s817_s8  ;;  %v592_v1 = vlaneseq }
  0x34   : > { %301 = vrot.lane.b32.xlu1 %v273_v2, %s817_s8  ;;  %320 = vrot.lane.b32.xlu0 %v284_v4, %s818_s9 }
  0x38   : > { %287 = vrot.lane.b32.xlu1 %v273_v2, %s819_s10  ;;  %316 = vrot.lane.b32.xlu0 %v283_v5, %s818_s9  ;;  %v593_v2 = vshrl.u32 %v592_v1, 7 }
  0x3a   : > { %v602_v3 = vsub.s32 2, %v593_v2 }
  0x3c   : > { %285 = vrot.lane.b32.xlu1 %v283_v5, %s819_s10  ;;  %289 = vrot.lane.b32.xlu0 %v284_v4, %s819_s10  ;;  %v590_v5 = vld [vmem:[%s921_s3] sm:$0x7] }
  0x40   : > { %425 = vperm.xlu0 %799, %v422_v7  }
  0x82   : > { %v396_v8 = vpop.permute.xlu0 %395  ;;  %v392_v9 = vpop.permute.xlu1 %391 }
  0x83   : > { %405 = vst.msk [vmem:[#allocation2 + $0x70] sm:$0xf] %vm281_vm0, %v396_v8 }
  0x86   : > { %v366_v10 = vpop.permute.xlu0 %365  ;;  %v379_v11 = vpop.permute.xlu1 %378 }
  0x87   : > { %375 = vst.msk [vmem:[#allocation2 + $0x58] sm:$0xf] %vm281_vm0, %v366_v10 }
  0x8a   : > { %v364_v12 = vpop.permute.xlu1 %363  ;;  %v394_v13 = vpop.permute.xlu0 %393  ;;  %v421_v14 = vld [vmem:[#allocation2 + $0x70] sm:$0xf] }
  0x8b   : > { %v369_v15 = vsel %vm367_vm2, %v364_v12, %v366_v10  ;;  %v398_v16 = vsel %vm397_vm3, %v392_v9, %v394_v13  ;;  %v399_v17 = vsel %vm397_vm3, %v394_v13, %v396_v8  ;;  %766 = vmatpush3.msk.msra.mxu1 %vm432_vm4, %v421_v14  ;;  %v603_v8 = vrot.slane %v590_v5, %v602_v3 }
  0x8c   : > { %374 = vst [vmem:[#allocation2 + $0x50] sm:$0xf] %v369_v15  ;;  %403 = vst [vmem:[#allocation2 + $0x60] sm:$0xf] %v398_v16  ;;  %767 = vmatprep.subr.mxu1 %v811_v0  ;;  %v598_v9 = vsub.s32 1, %v593_v2 }
  0x8d   : > { %404 = vst [vmem:[#allocation2 + $0x68] sm:$0xf] %v399_v17 }
  0x8e   : > { %v362_v18 = vpop.permute.xlu1 %361  ;;  %v381_v19 = vpop.permute.xlu0 %380 }
  0x8f   : > { %v368_v20 = vsel %vm367_vm2, %v362_v18, %v364_v12  ;;  %v384_v21 = vsel %vm382_vm6, %v379_v11, %v381_v19  ;;  %390 = vst.msk [vmem:[#allocation2 + $0x58] sm:$0xf0] %vm299_vm5, %v381_v19  ;;  %v599_v19 = vrot.slane %v590_v5, %v598_v9 }
  0x90   : > { %373 = vst [vmem:[#allocation2 + $0x48] sm:$0xf] %v368_v20  ;;  %389 = vst [vmem:[#allocation2 + $0x50] sm:$0xf0] %v384_v21 }
  0x92   : > { %v334_v22 = vpop.permute.xlu1 %333  ;;  %v377_v23 = vpop.permute.xlu0 %376 }
  0x93   : > { %v383_v24 = vsel %vm382_vm6, %v377_v23, %v379_v11  ;;  %v419_v26 = vld [vmem:[#allocation2 + $0x60] sm:$0xf] }
  0x94   : > { %v420_v25 = vld [vmem:[#allocation2 + $0x68] sm:$0xf]  ;;  %388 = vst [vmem:[#allocation2 + $0x48] sm:$0xf0] %v383_v24 }
  0x95   : > { %752 = vmatprep.subr.msk.mxu0 %vm432_vm4, %v420_v25 }
  0x96   : > { %753 = vmatpush1.msk.msra.mxu0 %vm432_vm4, %v419_v26  ;;  %v349_v27 = vpop.permute.xlu1 %348  ;;  %v336_v28 = vpop.permute.xlu0 %335  ;;  %v418_v29 = vld [vmem:[#allocation2 + $0x58] sm:$0xff] }
  0x97   : > { %v339_v30 = vsel %vm337_vm7, %v334_v22, %v336_v28  ;;  %345 = vst.msk [vmem:[#allocation2 + $0x40] sm:$0xf] %vm281_vm0, %v336_v28  ;;  %768 = vmatpush3.msra.mxu1 %v418_v29  ;;  %v417_v31 = vld [vmem:[#allocation2 + $0x50] sm:$0xff] }
  0x98   : > { %344 = vst [vmem:[#allocation2 + $0x38] sm:$0xf] %v339_v30  ;;  %466 = vmatprep.subr.mxu0 %v417_v31  ;;  %769 = vmatprep.subr.mxu1 %v811_v0 }
  0x9a   : > { %v332_v32 = vpop.permute.xlu1 %331  ;;  %v351_v33 = vpop.permute.xlu0 %350 }
  0x9b   : > { %v338_v34 = vsel %vm337_vm7, %v332_v32, %v334_v22  ;;  %v354_v35 = vsel %vm352_vm8, %v349_v27, %v351_v33  ;;  %360 = vst.msk [vmem:[#allocation2 + $0x40] sm:$0xf0] %vm299_vm5, %v351_v33  ;;  %v416_v36 = vld [vmem:[#allocation2 + $0x48] sm:$0xff] }
  0x9c   : > { %343 = vst [vmem:[#allocation2 + $0x30] sm:$0xf] %v338_v34  ;;  %359 = vst [vmem:[#allocation2 + $0x38] sm:$0xf0] %v354_v35  ;;  %467 = vmatpush1.msra.mxu0 %v416_v36 }
  0x9e   : > { %v304_v37 = vpop.permute.xlu1 %303  ;;  %v347_v38 = vpop.permute.xlu0 %346 }
  0x9f   : > { %v353_v39 = vsel %vm352_vm8, %v347_v38, %v349_v27 }
  0xa0   : > { %358 = vst [vmem:[#allocation2 + $0x30] sm:$0xf0] %v353_v39 }
  0xa2   : > { %v319_v40 = vpop.permute.xlu1 %318  ;;  %v306_v41 = vpop.permute.xlu0 %305  ;;  %v415_v42 = vld [vmem:[#allocation2 + $0x40] sm:$0xff] }
  0xa3   : > { %v309_v43 = vsel %vm307_vm9, %v304_v37, %v306_v41  ;;  %315 = vst.msk [vmem:[#allocation2 + $0x28] sm:$0xf] %vm281_vm0, %v306_v41  ;;  %770 = vmatpush3.msra.mxu1 %v415_v42  ;;  %v414_v44 = vld [vmem:[#allocation2 + $0x38] sm:$0xff] }
  0xa4   : > { %314 = vst [vmem:[#allocation2 + $0x20] sm:$0xf] %v309_v43  ;;  %468 = vmatprep.subr.mxu0 %v414_v44  ;;  %771 = vmatprep.subr.mxu1 %v811_v0 }
  0xa6   : > { %v302_v45 = vpop.permute.xlu1 %301  ;;  %v321_v46 = vpop.permute.xlu0 %320 }
  0xa7   : > { %v308_v47 = vsel %vm307_vm9, %v302_v45, %v304_v37  ;;  %v324_v48 = vsel %vm322_vm10, %v319_v40, %v321_v46  ;;  %330 = vst.msk [vmem:[#allocation2 + $0x28] sm:$0xf0] %vm299_vm5, %v321_v46  ;;  %v413_v49 = vld [vmem:[#allocation2 + $0x30] sm:$0xff] }
  0xa8   : > { %313 = vst [vmem:[#allocation2 + $0x18] sm:$0xf] %v308_v47  ;;  %329 = vst [vmem:[#allocation2 + $0x20] sm:$0xf0] %v324_v48  ;;  %469 = vmatpush1.msra.mxu0 %v413_v49 }
  0xaa   : > { %v288_v50 = vpop.permute.xlu1 %287  ;;  %v317_v51 = vpop.permute.xlu0 %316 }
  0xab   : > { %v323_v52 = vsel %vm322_vm10, %v317_v51, %v319_v40 }
  0xac   : > { %328 = vst [vmem:[#allocation2 + $0x18] sm:$0xf0] %v323_v52 }
  0xae   : > { %v286_v53 = vpop.permute.xlu1 %285  ;;  %v290_v54 = vpop.permute.xlu0 %289  ;;  %v412_v55 = vld [vmem:[#allocation2 + $0x28] sm:$0xff] }
  0xaf   : > { %v292_v56 = vsel %vm291_vm11, %v286_v53, %v288_v50  ;;  %v293_v57 = vsel %vm291_vm11, %v288_v50, %v290_v54  ;;  %300 = vst.msk [vmem:[#allocation2 + $0x10] sm:$0xf0] %vm299_vm5, %v290_v54  ;;  %772 = vmatpush3.msra.mxu1 %v412_v55  ;;  %v411_v58 = vld [vmem:[#allocation2 + $0x20] sm:$0xff] }
  0xb0   : > { %297 = vst [vmem:[#allocation2] sm:$0xf0] %v292_v56  ;;  %298 = vst [vmem:[#allocation2 + $0x8] sm:$0xf0] %v293_v57  ;;  %470 = vmatprep.subr.mxu0 %v411_v58  ;;  %773 = vmatprep.subr.mxu1 %v811_v0  ;;  %v594_v0 = vsub.s32 0, %v593_v2 }
  0xb2   : > { %v595_v13 = vrot.slane %v590_v5, %v594_v0 }
  0xb3   : > { %v410_v59 = vld [vmem:[#allocation2 + $0x18] sm:$0xff] }
  0xb4   : > { %471 = vmatpush1.msra.mxu0 %v410_v59 }
  0xb6   : > { %v409_v61 = vld [vmem:[#allocation2 + $0x10] sm:$0xff] }
  0xb7   : > { %774 = vmatpush3.msra.mxu1 %v409_v61  ;;  %v408_v62 = vld [vmem:[#allocation2 + $0x8] sm:$0xff]  ;;  %v407_v63 = vld [vmem:[#allocation2] sm:$0xff] }
  0xb8   : > { %472 = vmatprep.subr.mxu0 %v408_v62  ;;  %776 = vmatmul.mubr.msk.f32.vlgmr.msra.gmra.mxu1 %vm428_vm12, %v406_v60 }
  0xb9   : > { %473 = vmatpush1.msra.mxu0 %v407_v63 }
  0xba   : > { %754 = vmatmul.mubr.msk.f32.vlgmr.msra.gmra.mxu0 %vm428_vm12, %v406_v60 }
  0xbb   : > { %v426_v4 = vpop.permute.xlu0 %425 }
 0x178   : > { %v579_v6 = vpop.f32.mrf.mxu1 }
 0x179   : > { %v580_v7 = vadd.f32 %v579_v6, %v426_v4 }
 0x17a   : > { %v508_v10 = vpop.f32.mrf.mxu0  ;;  %v777_v11 = vpop.f32.mrf.mxu1 }
 0x17b   : > { %v509_v12 = vadd.f32 %v508_v10, %v426_v4  ;;  %v585_v14 = vmax.f32 %v580_v7, 0.0 }
 0x17c   : > { %v510_v15 = vpop.f32.mrf.mxu0 }
 0x17d   : > { %v583_v16 = vmax.f32 %v509_v12, 0.0  ;;  %v609_v17 = vmul.f32 %v603_v8, %v585_v14  ;;  %v511_v18 = vadd.f32 %v510_v15, %v426_v4  ;;  %589 = vst.msk [vmem:[%s264_s20 + $0x10] sm:$0xff] %vm588_vm13, %v585_v14 }
 0x17f   : > { %586 = vst [vmem:[%s264_s20] sm:$0xff] %v583_v16  ;;  %v607_v20 = vmul.f32 %v595_v13, %v583_v16  ;;  %v584_v21 = vmax.f32 %v511_v18, 0.0  ;;  %v619_v22 = vmul.f32 %v609_v17, %v609_v17  ;;  %v611_v24 = vsel %vm588_vm13, %v609_v17, 0.0 }
 0x181   : > { %587 = vst [vmem:[%s264_s20 + $0x8] sm:$0xff] %v584_v21  ;;  %v608_v23 = vmul.f32 %v599_v19, %v584_v21  ;;  %v617_v25 = vmul.f32 %v607_v20, %v607_v20  ;;  %v621_v28 = vsel %vm588_vm13, %v619_v22, 0.0 }
 0x183   : > { %v618_v26 = vmul.f32 %v608_v23, %v608_v23  ;;  %v610_v27 = vadd.f32 %v608_v23, %v607_v20 }
 0x185   : > { %v612_v29 = vadd.f32 %v611_v24, %v610_v27  ;;  %v620_v30 = vadd.f32 %v618_v26, %v617_v25 }
 0x187   : > { %613 = vadd.xlane.f32.xlu1 %v612_v29  ;;  %v622_v31 = vadd.f32 %v621_v28, %v620_v30 }
 0x189   : > { %623 = vadd.xlane.f32.xlu0 %v622_v31 }
 0x210   : > { %v614_v32 = vpop.xlane.xlu1 %613 }
 0x211   : > { %616 = vst.msk [vmem:[%s268_s26] sm:$0xff] %vm615_vm14, %v614_v32 }
 0x212   : > { %v624_v33 = vpop.xlane.xlu0 %623 }
 0x213   : > { %625 = vst.msk [vmem:[%s272_s29] sm:$0xff] %vm615_vm14, %v624_v33 }
 0x214 PF: > { %s17_s21 = sadd.s32 1, %s809_s21  }
 0x215   : > { %p14_p4 = scmp.ge.s32.totalorder %s17_s21, 4  }
 0x217   :  { %16 = sbr.rel (!%p14_p4) target bundleno = 1 (0x1), region = 90 }

</bundles_post_ra>
